<compile_context>
chip_gen: v7x
topology: tpu7x:2x2x1
jax: 0.10.0
libtpu: 0.0.40
codegen_flags: <defaults>
</compile_context>

<pallas_src>
import jax
import jax.numpy as jnp
from jax.experimental import pallas as pl
from jax.experimental.pallas import tpu as pltpu


def _patch_linear_kernel(w_ref, x_ref, b_ref, o_ref):
    # w_ref: (O, K)   resident weight (~9 KiB)
    # x_ref: (K, tm)  lane-dense patch-feature tile
    # b_ref: (O, 1)   bias (f32)
    # o_ref: (O, tm)  lane-dense output tile
    acc = jnp.dot(w_ref[...], x_ref[...], preferred_element_type=jnp.float32)
    o_ref[...] = (acc + b_ref[...].astype(jnp.float32)).astype(o_ref.dtype)


def patch_partition(image, weight, bias, patch_size, *, tm=1024,
                    compute_dtype=None):
    """Equivalent of PatchPartition.forward(image).

    image:  (B, C, H, W)            -- NCHW, like PyTorch
    weight: (O, C, P, P)            -- Conv2d weight layout (O = C*P*P)
    bias:   (O,)
    tm:     token tile along the lane axis (rounded to a multiple of 128)
    compute_dtype: dtype for the matmul operands (e.g. jnp.bfloat16);
                   accumulation/bias stay f32, output keeps image.dtype.
    returns (B, O, H // P, W // P)  -- NCHW conv output
    """
    B, C, H, W = image.shape
    P = int(patch_size)
    assert H % P == 0 and W % P == 0, "image spatial dims must be multiples of P"
    Hp, Wp = H // P, W // P
    O = weight.shape[0]
    K = C * P * P
    assert weight.shape == (O, C, P, P)
    assert bias.shape == (O,)
    M = B * Hp * Wp

    cdt = compute_dtype if compute_dtype is not None else image.dtype

    # --- glue (plain JAX): patches flattened (C, kh, kw), tokens on last axis ---
    # (B,C,H,W) -> (B,C,Hp,P,Wp,P) -> (C,P,P,B,Hp,Wp) -> (K, M)
    x = image.reshape(B, C, Hp, P, Wp, P)
    x = jnp.transpose(x, (1, 3, 5, 0, 2, 4)).reshape(K, M).astype(cdt)
    w = weight.reshape(O, K).astype(cdt)            # rows flatten (c, kh, kw)
    b = bias.reshape(O, 1).astype(jnp.float32)

    # Tile the token axis: multiple of 128, no bigger than the padded problem.
    tm = max(128, min(int(tm), pl.cdiv(M, 128) * 128))
    tm = (tm // 128) * 128
    grid_m = pl.cdiv(M, tm)   # ragged last tile handled by Pallas edge masking

    out = pl.pallas_call(
        _patch_linear_kernel,
        out_shape=jax.ShapeDtypeStruct((O, M), image.dtype),
        grid_spec=pltpu.PrefetchScalarGridSpec(
            num_scalar_prefetch=0,
            grid=(grid_m,),
            in_specs=[
                pl.BlockSpec((O, K), lambda i: (0, 0)),    # weight resident
                pl.BlockSpec((K, tm), lambda i: (0, i)),   # lane-dense patch tile
                pl.BlockSpec((O, 1), lambda i: (0, 0)),    # bias resident
            ],
            out_specs=pl.BlockSpec((O, tm), lambda i: (0, i)),
        ),
        compiler_params=pltpu.CompilerParams(
            dimension_semantics=("parallel",)),
    )(w, x, b)

    # (O, M) with M ordered (B, Hp, Wp)  ->  NCHW (B, O, Hp, Wp)
    return out.reshape(O, B, Hp, Wp).transpose(1, 0, 2, 3)


def _reference_conv(image, weight, bias, patch_size):
    # XLA strided conv, NCHW / OIHW — used only for correctness checking.
    out = jax.lax.conv_general_dilated(
        image, weight,
        window_strides=(patch_size, patch_size),
        padding="VALID",
        dimension_numbers=("NCHW", "OIHW", "NCHW"))
    return out + bias.reshape(1, -1, 1, 1)


if __name__ == "__main__":
    patch_size = 4
    in_chs = 3                                     # fixed by the module
    out_chs = patch_size ** 2 * in_chs             # 48

    key = jax.random.PRNGKey(0)
    k_img, k_w, k_b = jax.random.split(key, 3)

    # Small, module-consistent shapes: B=2, C=3, H=W=16 -> output (2, 48, 4, 4)
    image = jax.random.normal(k_img, (2, in_chs, 16, 16), dtype=jnp.float32)
    weight = jax.random.normal(k_w, (out_chs, in_chs, patch_size, patch_size),
                               dtype=jnp.float32) * 0.1
    bias = jax.random.normal(k_b, (out_chs,), dtype=jnp.float32) * 0.1

    ref = _reference_conv(image, weight, bias, patch_size)

    # f32 path (matches the PyTorch module's precision).
    out = patch_partition(image, weight, bias, patch_size)
    out = jax.block_until_ready(out)
    assert out.shape == ref.shape == (2, out_chs, 4, 4)
    assert jnp.allclose(out, ref, atol=1e-4, rtol=1e-4)

    # bf16-operand path (memory-bound win at realistic M); f32 accumulation.
    out_bf16 = patch_partition(image, weight, bias, patch_size,
                               compute_dtype=jnp.bfloat16)
    out_bf16 = jax.block_until_ready(out_bf16)
    assert out_bf16.shape == ref.shape
    assert jnp.allclose(out_bf16, ref, atol=5e-2, rtol=5e-2)

    print("KERNEL_OK")
</pallas_src>

<mosaic_0001>
module attributes {stable_mosaic.version = 11 : i64} {
  func.func @_patch_linear_kernel(%arg0: i32, %arg1: memref<48x48xf32, #tpu.memory_space<vmem>>, %arg2: memref<48x128xf32, #tpu.memory_space<vmem>>, %arg3: memref<48x1xf32, #tpu.memory_space<vmem>>, %arg4: memref<48x128xf32, #tpu.memory_space<vmem>>) attributes {dimension_semantics = [#tpu.dimension_semantics<parallel>], iteration_bounds = array<i64: 1>, scalar_prefetch = 0 : i64, scratch_operands = 0 : i64, tpu.core_type = #tpu.core_type<tc>, window_params = [{pipeline_mode = #tpu.pipeline_mode<synchronous>, transform_indices = @transform_0, window_bounds = array<i64: 48, 48>}, {transform_indices = @transform_1, window_bounds = array<i64: 48, 128>}, {pipeline_mode = #tpu.pipeline_mode<synchronous>, transform_indices = @transform_2, window_bounds = array<i64: 48, 1>}, {transform_indices = @transform_3, window_bounds = array<i64: 48, 128>}]} {
    %c0 = arith.constant 0 : index
    %c0_0 = arith.constant 0 : index
    %0 = vector.load %arg1[%c0, %c0_0] : memref<48x48xf32, #tpu.memory_space<vmem>>, vector<48x48xf32>
    %c0_1 = arith.constant 0 : index
    %c0_2 = arith.constant 0 : index
    %1 = vector.load %arg2[%c0_1, %c0_2] : memref<48x128xf32, #tpu.memory_space<vmem>>, vector<48x128xf32>
    %cst = arith.constant dense<0.000000e+00> : vector<48x128xf32>
    %2 = tpu.matmul %0, %1, %cst {dimension_numbers = #tpu.dot_dimension_numbers<[1], [0], [0], [1], [0, 0, 1, 1], [], []>} : vector<48x48xf32>, vector<48x128xf32>, vector<48x128xf32> -> vector<48x128xf32>
    %c0_3 = arith.constant 0 : index
    %c0_4 = arith.constant 0 : index
    %3 = vector.load %arg3[%c0_3, %c0_4] : memref<48x1xf32, #tpu.memory_space<vmem>>, vector<48x1xf32>
    %4 = vector.broadcast %3 : vector<48x1xf32> to vector<48x128xf32>
    %5 = arith.addf %2, %4 : vector<48x128xf32>
    %c0_5 = arith.constant 0 : index
    %c0_6 = arith.constant 0 : index
    %6 = vector.load %arg4[%c0_5, %c0_6] : memref<48x128xf32, #tpu.memory_space<vmem>>, vector<48x128xf32>
    tpu.vector_store %arg4[%c0_5, %c0_6], %5 {strides = array<i32>} : memref<48x128xf32, #tpu.memory_space<vmem>>, vector<48x128xf32>,
    return
  }
  func.func @transform_0(%arg0: i32) -> (i32, i32) {
    %c0_i32 = arith.constant 0 : i32
    %c0_i32_0 = arith.constant 0 : i32
    %c0_i32_1 = arith.constant 0 : i32
    return %c0_i32, %c0_i32_0 : i32, i32
  }
  func.func @transform_1(%arg0: i32) -> (i32, i32) {
    %c0_i32 = arith.constant 0 : i32
    %c0_i32_0 = arith.constant 0 : i32
    return %c0_i32, %arg0 : i32, i32
  }
  func.func @transform_2(%arg0: i32) -> (i32, i32) {
    %c0_i32 = arith.constant 0 : i32
    %c0_i32_0 = arith.constant 0 : i32
    %c0_i32_1 = arith.constant 0 : i32
    return %c0_i32, %c0_i32_0 : i32, i32
  }
  func.func @transform_3(%arg0: i32) -> (i32, i32) {
    %c0_i32 = arith.constant 0 : i32
    %c0_i32_0 = arith.constant 0 : i32
    return %c0_i32, %arg0 : i32, i32
  }
}

</mosaic_0001>

<bundles_post_ra>
// kernel: tpu_custom_call.1
= control target key start
LH: loop header
LB: loop body
LE: loop exit
PB: predicated region body
PF: predicated region fallthrough
CT: control target
= control target key end

     0   :  { %v246_v3 = vmov 0   ;;  %vm62_vm0 = vcmask 392192   ;;  %s345_s1 = inlined_call_operand.vmem [shape: f32[48,32], index: 1, kind: input, shape index: {}]   ;;  %s346_s0 = inlined_call_operand.vmem [shape: f32[48,48], index: 0, kind: input, shape index: {}]   ;;  %s347_s2 = inlined_call_operand.vmem [shape: f32[48,1], index: 2, kind: input, shape index: {}]   ;;  %s348_s3 = inlined_call_operand.vmem [shape: f32[48,32], index: 3, kind: output, shape index: {}]  }
   0x1   :  { %v20_v0 = vld [vmem:[%s345_s1] sm:$0xff]  ;;  %v21_v1 = vld [vmem:[%s345_s1 + $0x8] sm:$0xff]  ;;  %v22_v2 = vld [vmem:[%s345_s1 + $0x10] sm:$0xff]  ;;  %245 = vset.pattern.permute.xlu1 %v246_v3  ;;  %244 = vset.pattern.permute.xlu0 %v246_v3 }
   0x2   :  { %v225_v4 = vpack.c.bf16 %v21_v1, %v20_v0  ;;  %v23_v5 = vld [vmem:[%s345_s1 + $0x18] sm:$0xff]  ;;  %v24_v7 = vld [vmem:[%s345_s1 + $0x20] sm:$0xff]  ;;  %v25_v8 = vld [vmem:[%s345_s1 + $0x28] sm:$0xff] }
   0x3   :  { %v229_v6 = vpack.c.bf16 %v23_v5, %v22_v2  ;;  %v14_v9 = vld [vmem:[%s346_s0] sm:$0xff]  ;;  %v16_v10 = vld [vmem:[%s346_s0 + $0x10] sm:$0xff]  ;;  %v233_v13 = vpack.c.bf16 %v25_v8, %v24_v7  ;;  %v29_v14 = vld [vmem:[%s347_s2 + $0x18] sm:$0xff] }
   0x4   :  { %226 = vmatprep.subr.bf16.mxu0 %v225_v4  ;;  %237 = vmatprep.subr.bf16.mxu1 %v225_v4  ;;  %v28_v11 = vld [vmem:[%s347_s2 + $0x10] sm:$0xff]  ;;  %v26_v12 = vld [vmem:[%s347_s2] sm:$0xff]  ;;  %v27_v15 = vld [vmem:[%s347_s2 + $0x8] sm:$0xff] }
   0x5   :  { %228 = vmatpush3.bf16.msra.mxu0 %v225_v4  ;;  %240 = vmatpush3.bf16.msra.mxu1 %v225_v4  ;;  %v15_v16 = vld [vmem:[%s346_s0 + $0x8] sm:$0xff]  ;;  %v17_v17 = vld [vmem:[%s346_s0 + $0x18] sm:$0xff]  ;;  %v18_v18 = vld [vmem:[%s346_s0 + $0x20] sm:$0xff] }
   0x6   :  { %230 = vmatprep.subr.bf16.mxu0 %v229_v6  ;;  %238 = vmatprep.subr.bf16.mxu1 %v229_v6  ;;  %v31_v19 = vld [vmem:[%s347_s2 + $0x28] sm:$0xff]  ;;  %v30_v20 = vld [vmem:[%s347_s2 + $0x20] sm:$0xff] }
   0x7   :  { %216 = vmatprep.mubr.msk.f32.mxu0 %vm62_vm0, %v14_v9  ;;  %219 = vmatprep.mubr.msk.f32.mxu1 %vm62_vm0, %v16_v10  ;;  %v19_v21 = vld [vmem:[%s346_s0 + $0x28] sm:$0xff] }
   0x8   :  { %44 = vperm.xlu1 %245, %v28_v11   ;;  %34 = vperm.xlu0 %244, %v26_v12  }
   0x9   :  { %232 = vmatpush3.bf16.msra.mxu0 %v229_v6  ;;  %241 = vmatpush3.bf16.msra.mxu1 %v229_v6 }
   0xa   :  { %234 = vmatprep.subr.bf16.mxu0 %v233_v13  ;;  %239 = vmatprep.subr.bf16.mxu1 %v233_v13 }
   0xc   :  { %49 = vperm.xlu1 %245, %v29_v14   ;;  %39 = vperm.xlu0 %244, %v27_v15  }
   0xd   :  { %236 = vmatpush3.bf16.msra.mxu0 %v233_v13  ;;  %242 = vmatpush3.bf16.msra.mxu1 %v233_v13 }
  0x10   :  { %217 = vmatmul.mubr.msk.f32.vlgmr.msra.gmra.mrb[0].mxu0 %vm62_vm0, %v15_v16  ;;  %220 = vmatmul.mubr.msk.f32.vlgmr.msra.gmra.mrb[0].mxu1 %vm62_vm0, %v17_v17 }
  0x11   :  { %222 = vmatprep.mubr.msk.f32.mxu1 %vm62_vm0, %v18_v18  ;;  %59 = vperm.xlu1 %245, %v31_v19  }
  0x12   :  { %54 = vperm.xlu0 %244, %v30_v20  }
  0x14   :  { %223 = vmatmul.mubr.msk.f32.gmra.mrb[2].mxu1 %vm62_vm0, %v19_v21 }
  0x87   :  { %v45_v22 = vpop.permute.xlu1 %44  ;;  %v35_v23 = vpop.permute.xlu0 %34 }
  0x8b   :  { %v50_v24 = vpop.permute.xlu1 %49  ;;  %v40_v25 = vpop.permute.xlu0 %39 }
  0x90   :  { %v60_v34 = vpop.permute.xlu1 %59 }
  0x91   :  { %v55_v36 = vpop.permute.xlu0 %54 }
  0xe3   :  { %v218_v26 = vpop.f32.mrb[0].mxu0  ;;  %v221_v27 = vpop.f32.mrb[0].mxu1 }
  0xe4   :  { %v153_v28 = vadd.f32 %v218_v26, %v40_v25  ;;  %v163_v29 = vadd.f32 %v221_v27, %v50_v24  ;;  %v147_v30 = vpop.f32.mrb[1].mxu0  ;;  %v157_v31 = vpop.f32.mrb[1].mxu1 }
  0xe5   :  { %v148_v32 = vadd.f32 %v147_v30, %v35_v23  ;;  %v158_v33 = vadd.f32 %v157_v31, %v45_v22 }
  0xe6   :  { %177 = vst [vmem:[%s348_s3 + $0x8] sm:$0xff] %v153_v28  ;;  %179 = vst [vmem:[%s348_s3 + $0x18] sm:$0xff] %v163_v29 }
  0xe7   :  { %176 = vst [vmem:[%s348_s3] sm:$0xff] %v148_v32  ;;  %178 = vst [vmem:[%s348_s3 + $0x10] sm:$0xff] %v158_v33  ;;  %v224_v35 = vpop.f32.mrb[2].mxu1 }
  0xe8   :  { %v173_v37 = vadd.f32 %v224_v35, %v60_v34  ;;  %v167_v38 = vpop.f32.mrb[3].mxu1 }
  0xe9   :  { %v168_v39 = vadd.f32 %v167_v38, %v55_v36 }
  0xea   :  { %181 = vst [vmem:[%s348_s3 + $0x28] sm:$0xff] %v173_v37 }
  0xeb   :  { %180 = vst [vmem:[%s348_s3 + $0x20] sm:$0xff] %v168_v39 }

</bundles_post_ra>
